<compile_context>
chip_gen: v7x
topology: tpu7x:2x2x1
jax: 0.10.0
libtpu: 0.0.40
codegen_flags: <defaults>
</compile_context>

<pallas_src>
import functools

import jax
import jax.numpy as jnp
from jax import lax
from jax.experimental import pallas as pl
from jax.experimental.pallas import tpu as pltpu


def _encoder_seq_kernel(x_ref, hc0_ref, wx_ref, wh_ref, b_ref,   # inputs (VMEM)
                        seq_ref, state_ref,                       # outputs (VMEM)
                        xproj_ref,                                # VMEM scratch
                        *, hidden_dim, seq_len):
    H = hidden_dim

    # Phase 1: hoisted input projection for ALL timesteps in one MXU pass:
    # (T, E) @ (E, 4H) + b.  Fills the MXU M-dim with T rows instead of 1 and
    # removes E from the serial per-step contraction.
    xproj_ref[...] = (
        jnp.dot(x_ref[...], wx_ref[...], preferred_element_type=jnp.float32)
        + b_ref[...])

    # Phase 2: serial LSTM recurrence.  (h, c) live in vregs as fori_loop
    # carries; only the hidden row is stored into the VMEM-resident output.
    def step(t, carry):
        h, c = carry
        gates = xproj_ref[pl.ds(t, 1), :] + jnp.dot(
            h, wh_ref[...], preferred_element_type=jnp.float32)   # (1, 4H)
        i_g = jax.nn.sigmoid(gates[:, 0 * H:1 * H])
        f_g = jax.nn.sigmoid(gates[:, 1 * H:2 * H])
        g_g = jnp.tanh(gates[:, 2 * H:3 * H])
        o_g = jax.nn.sigmoid(gates[:, 3 * H:4 * H])
        c_new = f_g * c + i_g * g_g
        h_new = o_g * jnp.tanh(c_new)
        seq_ref[pl.ds(t, 1), :] = h_new
        return h_new, c_new

    h0 = hc0_ref[0:1, :]
    c0 = hc0_ref[1:2, :]
    h_f, c_f = lax.fori_loop(0, seq_len, step, (h0, c0))

    state_ref[0:1, :] = h_f
    state_ref[1:2, :] = c_f


def lstm_sequence(params, words, h0, c0):
    """Runs the whole token sequence through the LSTM in ONE pallas_call
    (no grid; in-kernel time loop).

    words: int32 (T,) word indices.  h0, c0: initial state (any shape with H
    elements).  Returns (hidden_seq (T, H), h_final (1, H), c_final (1, H)).
    """
    emb_table = params["embedding"]          # (V, E) f32
    w_x = params["w_x"]                      # (E, 4H)
    w_h = params["w_h"]                      # (H, 4H)
    b = params["b"]                          # (4H,)  (b_ih + b_hh)
    E = emb_table.shape[1]
    H = w_h.shape[0]
    T = int(words.shape[0])

    words = words.astype(jnp.int32).reshape(T)
    # Pre-gather embedding rows in the wrapper: one contiguous (T, E) slab
    # into VMEM instead of T tiny per-step HBM row DMAs.
    x_seq = jnp.take(emb_table, words, axis=0)                    # (T, E)
    hc0 = jnp.concatenate([h0.reshape(1, H), c0.reshape(1, H)], axis=0)  # (2, H)

    kernel = functools.partial(_encoder_seq_kernel, hidden_dim=H, seq_len=T)
    vmem = pl.BlockSpec(memory_space=pltpu.MemorySpace.VMEM)

    seq, state = pl.pallas_call(
        kernel,
        out_shape=(
            jax.ShapeDtypeStruct((T, H), jnp.float32),   # hidden sequence
            jax.ShapeDtypeStruct((2, H), jnp.float32),   # stacked (h, c) final
        ),
        in_specs=[vmem, vmem, vmem, vmem, vmem],
        out_specs=(vmem, vmem),
        scratch_shapes=[pltpu.VMEM((T, 4 * H), jnp.float32)],     # X_proj slab
    )(x_seq, hc0, w_x, w_h, b.reshape(1, 4 * H))

    return seq, state[0:1, :], state[1:2, :]


def encoder_forward(params, word, state):
    """Mirrors Encoder.forward: one word index (shape (1,)), state = (h, c)
    each (1, 1, H).  Returns (result, (hidden, context)) with (1, 1, H) shapes."""
    H = params["w_h"].shape[0]
    seq, h_f, c_f = lstm_sequence(params, word.reshape(1), state[0], state[1])
    result = seq.reshape(1, 1, H)
    return result, (h_f.reshape(1, 1, H), c_f.reshape(1, 1, H))


def encoder_run(params, word_indices, hidden_dim):
    """Mirrors Encoder.run: zero-init state, feed the whole (already tokenized)
    index sequence through ONE fused pallas_call, return last output + state."""
    # TODO(synk): string tokenization / corpus lookup of Encoder.run is host-side
    # Python and stays outside the kernel; it only produces `word_indices`.
    h0 = jnp.zeros((1, 1, hidden_dim), jnp.float32)
    c0 = jnp.zeros((1, 1, hidden_dim), jnp.float32)
    seq, h_f, c_f = lstm_sequence(params, word_indices, h0, c0)
    T = word_indices.shape[0]
    output = seq[T - 1].reshape(1, 1, hidden_dim)
    return output, (h_f.reshape(1, 1, hidden_dim), c_f.reshape(1, 1, hidden_dim))


def _reference_run(params, words, h0, c0):
    """Pure-JAX reference reproducing torch.nn.Embedding + torch.nn.LSTM steps."""
    emb = params["embedding"]
    w_x, w_h, b = params["w_x"], params["w_h"], params["b"]
    E = emb.shape[1]
    H = w_h.shape[0]
    h = h0.reshape(1, H)
    c = c0.reshape(1, H)
    outs = []
    for t in range(words.shape[0]):
        x = emb[words[t]].reshape(1, E)
        gates = x @ w_x + h @ w_h + b
        i = jax.nn.sigmoid(gates[:, 0 * H:1 * H])
        f = jax.nn.sigmoid(gates[:, 1 * H:2 * H])
        g = jnp.tanh(gates[:, 2 * H:3 * H])
        o = jax.nn.sigmoid(gates[:, 3 * H:4 * H])
        c = f * c + i * g
        h = o * jnp.tanh(c)
        outs.append(h)
    return jnp.concatenate(outs, axis=0), h, c


def init_params(key, vocab_dim, embed_dim, hidden_dim):
    """Deterministic init (shapes match nn.Embedding + nn.LSTM).  Stores the
    weights pre-transposed: w_x (E, 4H), w_h (H, 4H), b = b_ih + b_hh (4H,)."""
    k_emb, k_wih, k_whh, k_bih, k_bhh = jax.random.split(key, 5)
    scale = 1.0 / jnp.sqrt(jnp.float32(hidden_dim))
    emb = jax.random.normal(k_emb, (vocab_dim, embed_dim), jnp.float32)
    # PyTorch stores weight_ih_l0 as (4H, E), weight_hh_l0 as (4H, H).
    w_ih = jax.random.uniform(k_wih, (4 * hidden_dim, embed_dim),
                              jnp.float32, -scale, scale)
    w_hh = jax.random.uniform(k_whh, (4 * hidden_dim, hidden_dim),
                              jnp.float32, -scale, scale)
    b_ih = jax.random.uniform(k_bih, (4 * hidden_dim,), jnp.float32, -scale, scale)
    b_hh = jax.random.uniform(k_bhh, (4 * hidden_dim,), jnp.float32, -scale, scale)
    return {"embedding": emb,
            "w_x": jnp.asarray(w_ih.T),     # (E, 4H)
            "w_h": jnp.asarray(w_hh.T),     # (H, 4H)
            "b": b_ih + b_hh}               # (4H,)


if __name__ == "__main__":
    VOCAB, EMBED, HIDDEN = 64, 32, 32
    SEQ_LEN = 8

    key = jax.random.PRNGKey(0)
    params = init_params(key, VOCAB, EMBED, HIDDEN)

    # --- Single-step forward (Encoder.forward semantics) ---
    word = jnp.array([7], dtype=jnp.int32)
    hidden0 = jnp.zeros((1, 1, HIDDEN), jnp.float32)
    context0 = jnp.zeros((1, 1, HIDDEN), jnp.float32)
    result, (hidden, context) = encoder_forward(params, word, (hidden0, context0))
    jax.block_until_ready((result, hidden, context))

    # --- Full-sequence run (Encoder.run loop) fused into ONE pallas_call ---
    words = jax.random.randint(jax.random.PRNGKey(1), (SEQ_LEN,), 0, VOCAB,
                               dtype=jnp.int32)
    output, (hidden_T, context_T) = encoder_run(params, words, HIDDEN)
    jax.block_until_ready((output, hidden_T, context_T))

    # --- Correctness against a pure-JAX reference of the LSTM recurrence ---
    zero = jnp.zeros((1, HIDDEN), jnp.float32)
    ref1_seq, ref1_h, ref1_c = _reference_run(params, word, zero, zero)
    refT_seq, refT_h, refT_c = _reference_run(params, words, zero, zero)

    assert jnp.allclose(result.reshape(1, HIDDEN), ref1_seq, atol=1e-4)
    assert jnp.allclose(hidden.reshape(1, HIDDEN), ref1_h, atol=1e-4)
    assert jnp.allclose(context.reshape(1, HIDDEN), ref1_c, atol=1e-4)

    assert jnp.allclose(output.reshape(1, HIDDEN), refT_seq[-1:], atol=1e-4)
    assert jnp.allclose(hidden_T.reshape(1, HIDDEN), refT_h, atol=1e-4)
    assert jnp.allclose(context_T.reshape(1, HIDDEN), refT_c, atol=1e-4)

    print("KERNEL_OK")
</pallas_src>

<mosaic_0001>
module attributes {stable_mosaic.version = 11 : i64} {
  func.func @_encoder_seq_kernel(%arg0: memref<1x32xf32, #tpu.memory_space<vmem>>, %arg1: memref<2x32xf32, #tpu.memory_space<vmem>>, %arg2: memref<32x128xf32, #tpu.memory_space<vmem>>, %arg3: memref<32x128xf32, #tpu.memory_space<vmem>>, %arg4: memref<1x128xf32, #tpu.memory_space<vmem>>, %arg5: memref<1x32xf32, #tpu.memory_space<vmem>>, %arg6: memref<2x32xf32, #tpu.memory_space<vmem>>, %arg7: memref<1x128xf32, #tpu.memory_space<vmem>>) attributes {dimension_semantics = [], scalar_prefetch = 0 : i64, scratch_operands = 1 : i64, tpu.core_type = #tpu.core_type<tc>} {
    %c0 = arith.constant 0 : index
    %c0_0 = arith.constant 0 : index
    %0 = vector.load %arg0[%c0, %c0_0] : memref<1x32xf32, #tpu.memory_space<vmem>>, vector<1x32xf32>
    %c0_1 = arith.constant 0 : index
    %c0_2 = arith.constant 0 : index
    %1 = vector.load %arg2[%c0_1, %c0_2] : memref<32x128xf32, #tpu.memory_space<vmem>>, vector<32x128xf32>
    %cst = arith.constant dense<0.000000e+00> : vector<1x128xf32>
    %2 = tpu.matmul %0, %1, %cst {dimension_numbers = #tpu.dot_dimension_numbers<[1], [0], [0], [1], [0, 0, 1, 1], [], []>} : vector<1x32xf32>, vector<32x128xf32>, vector<1x128xf32> -> vector<1x128xf32>
    %c0_3 = arith.constant 0 : index
    %c0_4 = arith.constant 0 : index
    %3 = vector.load %arg4[%c0_3, %c0_4] : memref<1x128xf32, #tpu.memory_space<vmem>>, vector<1x128xf32>
    %4 = arith.addf %2, %3 : vector<1x128xf32>
    %c0_5 = arith.constant 0 : index
    %c0_6 = arith.constant 0 : index
    %5 = vector.load %arg7[%c0_5, %c0_6] : memref<1x128xf32, #tpu.memory_space<vmem>>, vector<1x128xf32>
    tpu.vector_store %arg7[%c0_5, %c0_6], %4 {strides = array<i32>} : memref<1x128xf32, #tpu.memory_space<vmem>>, vector<1x128xf32>,
    %c0_7 = arith.constant 0 : index
    %c0_8 = arith.constant 0 : index
    %6 = vector.load %arg1[%c0_7, %c0_8] : memref<2x32xf32, #tpu.memory_space<vmem>>, vector<1x32xf32>
    %c1 = arith.constant 1 : index
    %c0_9 = arith.constant 0 : index
    %7 = vector.load %arg1[%c1, %c0_9] : memref<2x32xf32, #tpu.memory_space<vmem>>, vector<1x32xf32>
    %c0_i32 = arith.constant 0 : i32
    %8 = arith.index_cast %c0_i32 : i32 to index
    %c0_10 = arith.constant 0 : index
    %9 = vector.load %arg7[%8, %c0_10] : memref<1x128xf32, #tpu.memory_space<vmem>>, vector<1x128xf32>
    %c0_11 = arith.constant 0 : index
    %c0_12 = arith.constant 0 : index
    %10 = vector.load %arg3[%c0_11, %c0_12] : memref<32x128xf32, #tpu.memory_space<vmem>>, vector<32x128xf32>
    %cst_13 = arith.constant dense<0.000000e+00> : vector<1x128xf32>
    %11 = tpu.matmul %6, %10, %cst_13 {dimension_numbers = #tpu.dot_dimension_numbers<[1], [0], [0], [1], [0, 0, 1, 1], [], []>} : vector<1x32xf32>, vector<32x128xf32>, vector<1x128xf32> -> vector<1x128xf32>
    %12 = arith.addf %9, %11 : vector<1x128xf32>
    %13 = vector.extract_strided_slice %12 {offsets = [0, 0], sizes = [1, 32], strides = [1, 1]} : vector<1x128xf32> to vector<1x32xf32>
    %14 = arith.negf %13 : vector<1x32xf32>
    %15 = math.exp %14 : vector<1x32xf32>
    %cst_14 = arith.constant 1.000000e+00 : f32
    %16 = vector.broadcast %cst_14 : f32 to vector<1x32xf32>
    %17 = arith.addf %16, %15 : vector<1x32xf32>
    %18 = arith.divf %16, %17 : vector<1x32xf32>
    %19 = vector.extract_strided_slice %12 {offsets = [0, 32], sizes = [1, 32], strides = [1, 1]} : vector<1x128xf32> to vector<1x32xf32>
    %20 = arith.negf %19 : vector<1x32xf32>
    %21 = math.exp %20 : vector<1x32xf32>
    %cst_15 = arith.constant 1.000000e+00 : f32
    %22 = vector.broadcast %cst_15 : f32 to vector<1x32xf32>
    %23 = arith.addf %22, %21 : vector<1x32xf32>
    %24 = arith.divf %22, %23 : vector<1x32xf32>
    %25 = vector.extract_strided_slice %12 {offsets = [0, 64], sizes = [1, 32], strides = [1, 1]} : vector<1x128xf32> to vector<1x32xf32>
    %26 = math.tanh %25 : vector<1x32xf32>
    %27 = vector.extract_strided_slice %12 {offsets = [0, 96], sizes = [1, 32], strides = [1, 1]} : vector<1x128xf32> to vector<1x32xf32>
    %28 = arith.negf %27 : vector<1x32xf32>
    %29 = math.exp %28 : vector<1x32xf32>
    %cst_16 = arith.constant 1.000000e+00 : f32
    %30 = vector.broadcast %cst_16 : f32 to vector<1x32xf32>
    %31 = arith.addf %30, %29 : vector<1x32xf32>
    %32 = arith.divf %30, %31 : vector<1x32xf32>
    %33 = arith.mulf %24, %7 : vector<1x32xf32>
    %34 = arith.mulf %18, %26 : vector<1x32xf32>
    %35 = arith.addf %33, %34 : vector<1x32xf32>
    %36 = math.tanh %35 : vector<1x32xf32>
    %37 = arith.mulf %32, %36 : vector<1x32xf32>
    %38 = arith.index_cast %c0_i32 : i32 to index
    %c0_17 = arith.constant 0 : index
    %39 = vector.load %arg5[%38, %c0_17] : memref<1x32xf32, #tpu.memory_space<vmem>>, vector<1x32xf32>
    tpu.vector_store %arg5[%38, %c0_17], %37 {strides = array<i32>} : memref<1x32xf32, #tpu.memory_space<vmem>>, vector<1x32xf32>,
    %c1_i32 = arith.constant 1 : i32
    %c0_18 = arith.constant 0 : index
    %c0_19 = arith.constant 0 : index
    %40 = vector.load %arg6[%c0_18, %c0_19] : memref<2x32xf32, #tpu.memory_space<vmem>>, vector<1x32xf32>
    tpu.vector_store %arg6[%c0_18, %c0_19], %37 {strides = array<i32>} : memref<2x32xf32, #tpu.memory_space<vmem>>, vector<1x32xf32>,
    %c1_20 = arith.constant 1 : index
    %c0_21 = arith.constant 0 : index
    %41 = vector.load %arg6[%c1_20, %c0_21] : memref<2x32xf32, #tpu.memory_space<vmem>>, vector<1x32xf32>
    tpu.vector_store %arg6[%c1_20, %c0_21], %35 {strides = array<i32>} : memref<2x32xf32, #tpu.memory_space<vmem>>, vector<1x32xf32>,
    return
  }
}

</mosaic_0001>

<bundles_post_ra>
// kernel: tpu_custom_call.1
= control target key start
LH: loop header
LB: loop body
LE: loop exit
PB: predicated region body
PF: predicated region fallthrough
CT: control target
= control target key end

     0   :  { %12 = vsyncpa [#allocation4], 0  ;;  %s636_s0 = inlined_call_operand.hbm [shape: f32[1,32], index: 0, kind: input, shape index: {}]   ;;  %s637_s1 = inlined_call_operand.vmem [shape: f32[2,32], index: 1, kind: input, shape index: {}]   ;;  %s638_s2 = inlined_call_operand.hbm [shape: f32[32,128], index: 2, kind: input, shape index: {}]   ;;  %s639_s3 = inlined_call_operand.hbm [shape: f32[32,128], index: 3, kind: input, shape index: {}]   ;;  %s640_s4 = inlined_call_operand.vmem [shape: f32[1,128], index: 4, kind: input, shape index: {}]   ;;  %s641_s5 = inlined_call_operand.hbm [shape: f32[1,32], index: 5, kind: output, shape index: {0}]   ;;  %s642_s6 = inlined_call_operand.hbm [shape: f32[2,32], index: 6, kind: output, shape index: {1}]  }
   0x1   :  { %13 = vsyncpa [#allocation7], 0 }
   0x2   :  { %14 = vsyncpa [#allocation5], 0 }
   0x3   :  { %15 = vsyncpa [#allocation11], 0  ;;  %s505_s21 = smov [#allocation6]   ;;  %s387_s25 = scalar_lea.hbm %s638_s2, 512 }
   0x4   :  { %s33_s22 = sshll.u32 %s505_s21, 4  ;;  %p388_p0 = scmp.ne.s32.totalorder %s638_s2, %s387_s25  ;;  %s34_s22 = int_to_ptr.vmem [resolvable:$true] %s33_s22 }
   0x5   :  { %p391_p1 = scmp.lt.u32.totalorder %s387_s25, %s638_s2 }
   0x7   :  { %p393_p2 = pnand %p391_p1, %p388_p0 }
   0x9   :  { %396 = shalt.err (!%p393_p2)
}
   0xa   :  { %s397_s30 = scalar_lea.vmem %s34_s22, 512  ;;  %p402_p4 = scmp.lt.s32.totalorder %s34_s22, %s34_s22 }
   0xb   :  { %p398_p3 = scmp.ne.s32.totalorder %s34_s22, %s397_s30  ;;  %p403_p5 = scmp.lt.s32.totalorder %s397_s30, %s397_s30 }
   0xd   :  { %p404_p6 = por %p403_p5, %p402_p4 }
   0xf   :  { %p405_p7 = pnand %p404_p6, %p398_p3 }
  0x11   :  { %408 = shalt.err (!%p405_p7)
}
  0x12   :  { %s506_s7 = smov 128   ;;  %s507_s8 = smov 8  }
  0x13   :  { %39 = dma.hbm_to_vmem [thread:$0]  %s638_s2, 512, %s34_s22, [#allocation7], %s506_s7, %s506_s7, %s507_s8  }
  0x14   :  { %s508_s11 = smov [#allocation3]   ;;  %s509_s13 = smov [#allocation8]  }
  0x15   :  { %s22_s12 = sshll.u32 %s508_s11, 4  ;;  %s45_s14 = sshll.u32 %s509_s13, 4  ;;  %s23_s12 = int_to_ptr.vmem [resolvable:$true] %s22_s12  ;;  %s46_s14 = int_to_ptr.vmem [resolvable:$true] %s45_s14 }
  0x16   :  { %s409_s17 = scalar_lea.hbm %s636_s0, 16 }
  0x17   :  { %p410_p8 = scmp.ne.s32.totalorder %s636_s0, %s409_s17  ;;  %p413_p9 = scmp.lt.u32.totalorder %s409_s17, %s636_s0 }
  0x19   :  { %p415_p10 = pnand %p413_p9, %p410_p8 }
  0x1b   :  { %418 = shalt.err (!%p415_p10)
}
  0x1c   :  { %s419_s2 = scalar_lea.vmem %s23_s12, 16  ;;  %s423_s22 = scalar_lea.vmem %s23_s12, 32 }
  0x1d   :  { %p420_p11 = scmp.ne.s32.totalorder %s23_s12, %s419_s2  ;;  %p424_p12 = scmp.lt.s32.totalorder %s23_s12, %s23_s12 }
  0x1e   :  { %p425_p13 = scmp.lt.s32.totalorder %s423_s22, %s419_s2 }
  0x20   :  { %p426_p0 = por %p425_p13, %p424_p12 }
  0x22   :  { %p427_p1 = pnand %p426_p0, %p420_p11 }
  0x24   :  { %430 = shalt.err (!%p427_p1)
}
  0x25   :  { %25 = dma.hbm_to_vmem [thread:$0]  %s636_s0, 16, %s23_s12, [#allocation4]  }
  0x26   :  { %s431_s27 = scalar_lea.hbm %s639_s3, 512 }
  0x27   :  { %p432_p2 = scmp.ne.s32.totalorder %s639_s3, %s431_s27  ;;  %p435_p3 = scmp.lt.u32.totalorder %s431_s27, %s639_s3 }
  0x29   :  { %p437_p4 = pnand %p435_p3, %p432_p2 }
  0x2b   :  { %440 = shalt.err (!%p437_p4)
}
  0x2c   :  { %s441_s10 = scalar_lea.vmem %s46_s14, 512  ;;  %p446_p6 = scmp.lt.s32.totalorder %s46_s14, %s46_s14 }
  0x2d   :  { %p442_p5 = scmp.ne.s32.totalorder %s46_s14, %s441_s10  ;;  %p447_p7 = scmp.lt.s32.totalorder %s441_s10, %s441_s10 }
  0x2f   :  { %p448_p8 = por %p447_p7, %p446_p6 }
  0x31   :  { %p449_p9 = pnand %p448_p8, %p442_p5 }
  0x33   :  { %452 = shalt.err (!%p449_p9)
}
  0x34   :  { %51 = dma.hbm_to_vmem [thread:$0]  %s639_s3, 512, %s46_s14, [#allocation7], %s506_s7, %s506_s7, %s507_s8  }
  0x35   :  { %497 = dma.done.wait [#allocation4], 16  }
  0x36   :  { %498 = vsyncadd [#allocation4], 4294967280 }
  0x37   :  { %499 = dma.done.wait [#allocation7], 1024  }
  0x38   :  { %500 = vsyncadd [#allocation7], 4294966272  ;;  %v510_v0 = vmov 0.0|0.0   ;;  %vm511_vm0 = vmmov 0   ;;  %v512_v1 = vmov 0.0   ;;  %v64_v2 = vld [vmem:[#allocation6] sm:$0xff]  ;;  %v243_v26 = vlaneseq }
  0x39   :  { %353 = vmatprep.subr.bf16.mxu0 %v510_v0  ;;  %339 = vmatprep.mubr.msk.f32.mxu0 %vm511_vm0, %v512_v1  ;;  %v65_v3 = vld [vmem:[#allocation6 + $0x8] sm:$0xff]  ;;  %v66_v4 = vld [vmem:[#allocation6 + $0x10] sm:$0xff]  ;;  %v67_v6 = vld [vmem:[#allocation6 + $0x18] sm:$0xff]  ;;  %vm69_vm1 = vcmask 261120   ;;  %v513_v24 = vmov 1966171168  }
  0x3a   :  { %359 = vmatprep.subr.bf16.mxu1 %v510_v0  ;;  %350 = vmatprep.mubr.msk.f32.mxu1 %vm511_vm0, %v512_v1  ;;  %v354_v5 = vpack.c.bf16 %v65_v3, %v64_v2  ;;  %v147_v7 = vld [vmem:[#allocation8] sm:$0xff]  ;;  %v148_v8 = vld [vmem:[#allocation8 + $0x8] sm:$0xff]  ;;  %v149_v9 = vld [vmem:[#allocation8 + $0x10] sm:$0xff]  ;;  %v357_v11 = vpack.c.bf16 %v67_v6, %v66_v4  ;;  %v241_v25 = vunpack.c.l.s4 %v513_v24  ;;  %v244_v28 = vshrl.u32 %v243_v26, 7  ;;  %s515_s15 = smov 32   ;;  %s517_s16 = smov [#allocation9]  }
  0x3b   :  { %v150_v10 = vld [vmem:[#allocation8 + $0x18] sm:$0xff]  ;;  %v360_v12 = vpack.c.bf16 %v148_v8, %v147_v7  ;;  %v144_v15 = vld [vmem:[%s637_s1] sm:$0x1]  ;;  %vm275_vm2 = vcmask 253952   ;;  %s293_s17 = sshll.u32 %s517_s16, 4  ;;  %s518_s18 = smov [#allocation10]   ;;  %s294_s17 = int_to_ptr.vmem [resolvable:$true] %s293_s17 }
  0x3c   :  { %355 = vmatpush3.bf16.msra.mxu0 %v354_v5  ;;  %v363_v13 = vpack.c.bf16 %v150_v10, %v149_v9  ;;  %v63_v14 = vld [vmem:[#allocation3] sm:$0x1]  ;;  %v68_v16 = vld [vmem:[%s640_s4] sm:$0x1]  ;;  %v242_v27 = vunpack.c.0.s8 %v241_v25  ;;  %s514_s4 = smov 64   ;;  %v270_v43 = vsub.s32 0, %v244_v28  ;;  %p458_p11 = scmp.lt.s32.totalorder %s294_s17, %s294_s17 }
  0x3d   :  { %356 = vmatprep.subr.bf16.mxu0 %v510_v0  ;;  %361 = vmatpush3.bf16.msra.mxu1 %v360_v12  ;;  %v320_v30 = vld.sshfl [vmem:[%s637_s1 + $0x1] sm:$0x1 pattern:$0x75316420]  ;;  %s516_s1 = smov 96   ;;  %s303_s19 = sshll.u32 %s518_s18, 4  ;;  %s605_s19 = int_to_ptr.vmem [resolvable:$true] %s303_s19 }
  0x3e   :  { %362 = vmatprep.subr.bf16.mxu1 %v510_v0  ;;  %v245_v29 = vsub.s32 %v242_v27, %v244_v28  ;;  %s453_s20 = scalar_lea.vmem %s294_s17, 16  ;;  %s457_s21 = scalar_lea.vmem %s294_s17, 32 }
  0x3f   :  { %p454_p10 = scmp.ne.s32.totalorder %s294_s17, %s453_s20  ;;  %p459_p12 = scmp.lt.s32.totalorder %s457_s21, %s453_s20 }
  0x40   :  { %358 = vmatpush3.bf16.msra.mxu0 %v357_v11  ;;  %v246_v32 = vrot.slane %v320_v30, %v245_v29 }
  0x41   :  { %364 = vmatpush3.bf16.msra.mxu1 %v363_v13  ;;  %p460_p13 = por %p459_p12, %p458_p11 }
  0x43   :  { %340 = vmatmul.mubr.msk.f32.vlgmr.msra.gmra.mrb[0].mxu0 %vm69_vm1, %v63_v14  ;;  %p461_p0 = pnand %p460_p13, %p454_p10 }
  0x44   :  { %351 = vmatmul.mubr.msk.f32.vlgmr.msra.gmra.mrb[0].mxu1 %vm69_vm1, %v144_v15 }
 0x116   :  { %v139_v17 = vpop.f32.mrb[0].mxu0 }
 0x117   :  { %v140_v18 = vadd.f32 %v139_v17, %v68_v16  ;;  %v341_v19 = vpop.f32.mrb[1].mxu0  ;;  %v220_v20 = vpop.f32.mrb[0].mxu1 }
 0x118   :  { %v352_v21 = vpop.f32.mrb[1].mxu1 }
 0x119   :  { %143 = vst [vmem:[#allocation2] sm:$0x1] %v140_v18 }
 0x120   :  { %v146_v22 = vld [vmem:[#allocation2] sm:$0x1] }
 0x121   :  { %v224_v23 = vadd.f32 %v220_v20, %v146_v22 }
 0x123   :  { %379 = vtanh.f32 %v224_v23  ;;  %v319_v33 = vmul.f32 -1.442695, %v224_v23 }
 0x125   :  { %381 = vpow2.f32 %v319_v33 }
 0x12d   :  { %v380_v31 = vpop.eup %379 }
 0x12e   :  { %252 = vrot.lane.b32.xlu0 %v380_v31, %s514_s4 }
 0x12f   :  { %v382_v34 = vpop.eup %381 }
 0x130   :  { %v228_v35 = vadd.f32 1.0, %v382_v34 }
 0x132   :  { %247 = vrot.lane.b32.xlu0 %v246_v32, %s515_s15  ;;  %383 = vrcp.f32 %v228_v35 }
 0x13c   :  { %v384_v36 = vpop.eup %383 }
 0x1a0   :  { %v253_v37 = vpop.permute.xlu0 %252 }
 0x1a1   :  { %v255_v38 = vmul.f32 %v384_v36, %v253_v37 }
 0x1a3   :  { %257 = vrot.lane.b32.xlu1 %v255_v38, %s515_s15 }
 0x1a4   :  { %v248_v39 = vpop.permute.xlu0 %247 }
 0x1a5   :  { %v250_v40 = vmul.f32 %v384_v36, %v248_v39 }
 0x215   :  { %v258_v41 = vpop.permute.xlu1 %257 }
 0x216   :  { %v260_v42 = vadd.f32 %v258_v41, %v250_v40 }
 0x218   :  { %385 = vtanh.f32 %v260_v42  ;;  %v282_v45 = vrot.slane %v260_v42, %v270_v43 }
 0x222   :  { %v386_v44 = vpop.eup %385 }
 0x223   :  { %263 = vrot.lane.b32.xlu1 %v386_v44, %s514_s4 }
 0x227   :  { %283 = vrot.lane.b32.xlu1 %v282_v45, %s516_s1 }
 0x295   :  { %v264_v46 = vpop.permute.xlu1 %263 }
 0x296   :  { %v266_v47 = vmul.f32 %v384_v36, %v264_v46 }
 0x298   :  { %v271_v48 = vrot.slane %v266_v47, %v270_v43 }
 0x299   :  { %v284_v49 = vpop.permute.xlu1 %283 }
 0x29a   :  { %286 = vst.msk [vmem:[#allocation10 + $0x1] sm:$0x1] %vm275_vm2, %v284_v49  ;;  %272 = vrot.lane.b32.xlu0 %v271_v48, %s515_s15 }
 0x30c   :  { %v273_v50 = vpop.permute.xlu0 %272 }
 0x30d   :  { %277 = vst.msk [vmem:[#allocation10] sm:$0x1] %vm275_vm2, %v273_v50  ;;  %276 = vst.msk [vmem:[#allocation9] sm:$0x1] %vm275_vm2, %v273_v50 }
 0x30e   :  { %464 = shalt.err (!%p461_p0)
}
 0x30f   :  { %s465_s23 = scalar_lea.hbm %s641_s5, 16 }
 0x310   :  { %p466_p1 = scmp.ne.s32.totalorder %s641_s5, %s465_s23  ;;  %p469_p2 = scmp.lt.u32.totalorder %s465_s23, %s641_s5 }
 0x312   :  { %p471_p3 = pnand %p469_p2, %p466_p1 }
 0x314   :  { %474 = shalt.err (!%p471_p3)
}
 0x315   :  { %296 = dma.vmem_to_hbm [thread:$0]  %s294_s17, 16, %s641_s5, [#allocation5]  }
 0x316   :  { %s475_s30 = scalar_lea.vmem %s605_s19, 32  ;;  %p480_p5 = scmp.lt.s32.totalorder %s605_s19, %s605_s19 }
 0x317   :  { %p476_p4 = scmp.ne.s32.totalorder %s605_s19, %s475_s30  ;;  %p481_p6 = scmp.lt.s32.totalorder %s475_s30, %s475_s30 }
 0x319   :  { %p482_p7 = por %p481_p6, %p480_p5 }
 0x31b   :  { %p483_p8 = pnand %p482_p7, %p476_p4 }
 0x31d   :  { %486 = shalt.err (!%p483_p8)
}
 0x31e   :  { %s487_s0 = scalar_lea.hbm %s642_s6, 32 }
 0x31f   :  { %p488_p9 = scmp.ne.s32.totalorder %s642_s6, %s487_s0  ;;  %p491_p10 = scmp.lt.u32.totalorder %s487_s0, %s642_s6 }
 0x321   :  { %p493_p11 = pnand %p491_p10, %p488_p9 }
 0x323   :  { %496 = shalt.err (!%p493_p11)
}
 0x324   :  { %306 = dma.vmem_to_hbm [thread:$0]  %s605_s19, 32, %s642_s6, [#allocation11]  }
 0x325   :  { %501 = dma.done.wait [#allocation5], 16  }
 0x326   :  { %502 = vsyncadd [#allocation5], 4294967280 }
 0x327   :  { %503 = dma.done.wait [#allocation11], 32  }
 0x328   :  { %504 = vsyncadd [#allocation11], 4294967264 }
 0x329   :  { %313 = vsyncpa [#allocation4], 1 }
 0x32a   :  { %314 = vsyncpa [#allocation7], 1 }
 0x32b   :  { %315 = vsyncpa [#allocation5], 1 }
 0x32c   :  { %316 = vsyncpa [#allocation11], 1 }

</bundles_post_ra>
